<compile_context>
chip_gen: v6e
topology: v6e:2x2x1
jax: 0.10.0
libtpu: 0.0.40
codegen_flags: <defaults>
</compile_context>

<pallas_src>
import functools

import jax
import jax.numpy as jnp
from jax.experimental import pallas as pl
from jax.experimental.pallas import tpu as pltpu


def _round_up(n: int, m: int) -> int:
    return ((n + m - 1) // m) * m


def _pad2d(a, rows: int, cols: int):
    return jnp.pad(a, ((0, rows - a.shape[0]), (0, cols - a.shape[1])))


def acs_deepnet_kernel(x_ref, w1_ref, b1_ref, w23_ref, b23_ref, o_ref, *, precision):
    # fc1 + ReLU: MXU dot with f32 accumulation, epilogue (bias + ReLU) in f32.
    h = jnp.dot(x_ref[...], w1_ref[...],
                preferred_element_type=jnp.float32, precision=precision)
    h = jnp.maximum(h + b1_ref[...], 0.0)
    # Fused fc2+fc3 (the reference forward has no nonlinearity between them).
    out = jnp.dot(h.astype(w23_ref.dtype), w23_ref[...],
                  preferred_element_type=jnp.float32, precision=precision)
    o_ref[...] = (out + b23_ref[...]).astype(o_ref.dtype)


def acs_deepnet_forward(x, params, *, tb=256, operand_dtype=jnp.float32, precision=None):
    """x: [B, input_size] float32. params: dict of pre-transposed weights/biases.

    tb: batch tile size (rounded to a multiple of 8 sublanes).
    operand_dtype: jnp.float32 or jnp.bfloat16 for the MXU operands
                   (accumulation and epilogue always stay f32).
    precision: optional jax.lax.Precision for the in-kernel dots.
    """
    w1, b1 = params["w1"], params["b1"]
    w2, b2 = params["w2"], params["b2"]
    w3, b3 = params["w3"], params["b3"]

    B, in_size = x.shape
    hidden = w1.shape[1]
    num_classes = w3.shape[1]

    # --- Algebraic fusion of fc2/fc3 (done once, in f32, HIGHEST precision) ---
    hi = jax.lax.Precision.HIGHEST
    w23 = jnp.dot(w2, w3, precision=hi)              # [hidden, num_classes]
    b23 = jnp.dot(b2, w3, precision=hi) + b3         # [1, num_classes]

    # --- Lane-dense padding: hidden & output feature dims -> multiples of 128 ---
    h_pad = _round_up(hidden, 128)
    c_pad = _round_up(num_classes, 128)
    w1_p = _pad2d(w1, in_size, h_pad).astype(operand_dtype)
    b1_p = _pad2d(b1, 1, h_pad).astype(jnp.float32)
    w23_p = _pad2d(w23, h_pad, c_pad).astype(operand_dtype)
    b23_p = _pad2d(b23, 1, c_pad).astype(jnp.float32)

    # --- Batch tiling: sublane-aligned tile, pad rows so every block is full ---
    tb_eff = min(tb, _round_up(B, 8))
    tb_eff = max(8, _round_up(tb_eff, 8))
    b_pad = _round_up(B, tb_eff)
    x_p = jnp.pad(x, ((0, b_pad - B), (0, 0))).astype(operand_dtype)

    grid = (b_pad // tb_eff,)

    # --- Explicit VMEM budget: resident weights + double-buffered x/out tiles ---
    itemsize = jnp.dtype(operand_dtype).itemsize
    est_vmem = (
        2 * tb_eff * in_size * itemsize                          # x (double-buffered)
        + 2 * tb_eff * c_pad * 4                                 # out (double-buffered, f32)
        + tb_eff * h_pad * 4                                     # live hidden activation
        + 2 * (in_size * h_pad + h_pad * c_pad) * itemsize       # weights
        + 2 * (h_pad + c_pad) * 4                                # biases
    )
    vmem_limit = int(min(max(4 * est_vmem, 8 * 1024 * 1024), 64 * 1024 * 1024))

    kernel = functools.partial(acs_deepnet_kernel, precision=precision)

    out_padded = pl.pallas_call(
        kernel,
        out_shape=jax.ShapeDtypeStruct((b_pad, c_pad), jnp.float32),
        grid=grid,
        in_specs=[
            pl.BlockSpec((tb_eff, in_size), lambda i: (i, 0)),   # x: streamed over batch
            pl.BlockSpec((in_size, h_pad), lambda i: (0, 0)),    # w1: VMEM-resident
            pl.BlockSpec((1, h_pad), lambda i: (0, 0)),          # b1: VMEM-resident
            pl.BlockSpec((h_pad, c_pad), lambda i: (0, 0)),      # w23: VMEM-resident
            pl.BlockSpec((1, c_pad), lambda i: (0, 0)),          # b23: VMEM-resident
        ],
        out_specs=pl.BlockSpec((tb_eff, c_pad), lambda i: (i, 0)),
        compiler_params=pltpu.CompilerParams(
            dimension_semantics=("parallel",),   # shards batch tiles across v7x's 2 TCs
            vmem_limit_bytes=vmem_limit,
        ),
    )(x_p, w1_p, b1_p, w23_p, b23_p)

    return out_padded[:B, :num_classes]


def init_params(key, input_size, hidden_size=100, num_classes=1):
    """Deterministic init mimicking PyTorch nn.Linear default (U[-1/sqrt(fan_in), +])."""
    def linear_init(k, fan_in, fan_out):
        kw, kb = jax.random.split(k)
        bound = 1.0 / jnp.sqrt(jnp.float32(fan_in))
        # Stored already transposed: [fan_in, fan_out]
        w = jax.random.uniform(kw, (fan_in, fan_out), jnp.float32, -bound, bound)
        b = jax.random.uniform(kb, (1, fan_out), jnp.float32, -bound, bound)
        return w, b

    k1, k2, k3 = jax.random.split(key, 3)
    w1, b1 = linear_init(k1, input_size, hidden_size)
    w2, b2 = linear_init(k2, hidden_size, hidden_size)
    w3, b3 = linear_init(k3, hidden_size, num_classes)
    return {"w1": w1, "b1": b1, "w2": w2, "b2": b2, "w3": w3, "b3": b3}


def acs_deepnet_reference(x, p, precision=None):
    """Unfused 3-layer reference, matching the PyTorch forward()."""
    h = jnp.maximum(jnp.dot(x, p["w1"], precision=precision) + p["b1"], 0.0)
    h = jnp.dot(h, p["w2"], precision=precision) + p["b2"]
    return jnp.dot(h, p["w3"], precision=precision) + p["b3"]


if __name__ == "__main__":
    key = jax.random.PRNGKey(0)
    # Small shapes; batch=10 deliberately not a multiple of 8 to exercise row padding.
    batch, input_size, hidden, num_classes = 10, 16, 32, 1

    kx, kp = jax.random.split(key)
    x = jax.random.normal(kx, (batch, input_size), jnp.float32)
    params = init_params(kp, input_size, hidden_size=hidden, num_classes=num_classes)

    # Exact-math reference: unfused graph at f32 HIGHEST precision.
    ref = acs_deepnet_reference(x, params, precision=jax.lax.Precision.HIGHEST)

    # f32-operand path (default MXU precision = bf16 passes with f32 accumulation;
    # tolerance covers the bf16 operand rounding vs the exact-f32 reference).
    out = acs_deepnet_forward(x, params)
    jax.block_until_ready(out)
    assert out.shape == (batch, num_classes)
    assert jnp.allclose(out, ref, atol=1e-2, rtol=1e-2), "f32 path mismatch vs reference"

    # bf16-operand path (bandwidth-optimized for v6e/v7x); accumulation stays f32.
    out_bf16 = acs_deepnet_forward(x, params, operand_dtype=jnp.bfloat16)
    jax.block_until_ready(out_bf16)
    assert out_bf16.shape == (batch, num_classes)
    assert jnp.allclose(out_bf16, ref, atol=5e-2, rtol=5e-2), "bf16 path mismatch vs reference"

    print("KERNEL_OK")
</pallas_src>

<mosaic_0001>
module attributes {stable_mosaic.version = 11 : i64} {
  func.func @acs_deepnet_kernel(%arg0: i32, %arg1: memref<16x16xf32, #tpu.memory_space<vmem>>, %arg2: memref<16x128xf32, #tpu.memory_space<vmem>>, %arg3: memref<1x128xf32, #tpu.memory_space<vmem>>, %arg4: memref<128x128xf32, #tpu.memory_space<vmem>>, %arg5: memref<1x128xf32, #tpu.memory_space<vmem>>, %arg6: memref<16x128xf32, #tpu.memory_space<vmem>>) attributes {dimension_semantics = [#tpu.dimension_semantics<parallel>], iteration_bounds = array<i64: 1>, scalar_prefetch = 0 : i64, scratch_operands = 0 : i64, tpu.core_type = #tpu.core_type<tc>, window_params = [{transform_indices = @transform_0, window_bounds = array<i64: 16, 16>}, {pipeline_mode = #tpu.pipeline_mode<synchronous>, transform_indices = @transform_1, window_bounds = array<i64: 16, 128>}, {pipeline_mode = #tpu.pipeline_mode<synchronous>, transform_indices = @transform_2, window_bounds = array<i64: 1, 128>}, {pipeline_mode = #tpu.pipeline_mode<synchronous>, transform_indices = @transform_3, window_bounds = array<i64: 128, 128>}, {pipeline_mode = #tpu.pipeline_mode<synchronous>, transform_indices = @transform_4, window_bounds = array<i64: 1, 128>}, {transform_indices = @transform_5, window_bounds = array<i64: 16, 128>}]} {
    %c0 = arith.constant 0 : index
    %c0_0 = arith.constant 0 : index
    %0 = vector.load %arg1[%c0, %c0_0] : memref<16x16xf32, #tpu.memory_space<vmem>>, vector<16x16xf32>
    %c0_1 = arith.constant 0 : index
    %c0_2 = arith.constant 0 : index
    %1 = vector.load %arg2[%c0_1, %c0_2] : memref<16x128xf32, #tpu.memory_space<vmem>>, vector<16x128xf32>
    %cst = arith.constant dense<0.000000e+00> : vector<16x128xf32>
    %2 = tpu.matmul %0, %1, %cst {dimension_numbers = #tpu.dot_dimension_numbers<[1], [0], [0], [1], [0, 0, 1, 1], [], []>} : vector<16x16xf32>, vector<16x128xf32>, vector<16x128xf32> -> vector<16x128xf32>
    %c0_3 = arith.constant 0 : index
    %c0_4 = arith.constant 0 : index
    %3 = vector.load %arg3[%c0_3, %c0_4] : memref<1x128xf32, #tpu.memory_space<vmem>>, vector<1x128xf32>
    %4 = vector.broadcast %3 : vector<1x128xf32> to vector<16x128xf32>
    %5 = arith.addf %2, %4 : vector<16x128xf32>
    %cst_5 = arith.constant 0.000000e+00 : f32
    %6 = vector.broadcast %cst_5 : f32 to vector<16x128xf32>
    %7 = arith.maximumf %5, %6 : vector<16x128xf32>
    %c0_6 = arith.constant 0 : index
    %c0_7 = arith.constant 0 : index
    %8 = vector.load %arg4[%c0_6, %c0_7] : memref<128x128xf32, #tpu.memory_space<vmem>>, vector<128x128xf32>
    %cst_8 = arith.constant dense<0.000000e+00> : vector<16x128xf32>
    %9 = tpu.matmul %7, %8, %cst_8 {dimension_numbers = #tpu.dot_dimension_numbers<[1], [0], [0], [1], [0, 0, 1, 1], [], []>} : vector<16x128xf32>, vector<128x128xf32>, vector<16x128xf32> -> vector<16x128xf32>
    %c0_9 = arith.constant 0 : index
    %c0_10 = arith.constant 0 : index
    %10 = vector.load %arg5[%c0_9, %c0_10] : memref<1x128xf32, #tpu.memory_space<vmem>>, vector<1x128xf32>
    %11 = vector.broadcast %10 : vector<1x128xf32> to vector<16x128xf32>
    %12 = arith.addf %9, %11 : vector<16x128xf32>
    %c0_11 = arith.constant 0 : index
    %c0_12 = arith.constant 0 : index
    %13 = vector.load %arg6[%c0_11, %c0_12] : memref<16x128xf32, #tpu.memory_space<vmem>>, vector<16x128xf32>
    tpu.vector_store %arg6[%c0_11, %c0_12], %12 {strides = array<i32>} : memref<16x128xf32, #tpu.memory_space<vmem>>, vector<16x128xf32>,
    return
  }
  func.func @transform_0(%arg0: i32) -> (i32, i32) {
    %c0_i32 = arith.constant 0 : i32
    %c0_i32_0 = arith.constant 0 : i32
    return %arg0, %c0_i32 : i32, i32
  }
  func.func @transform_1(%arg0: i32) -> (i32, i32) {
    %c0_i32 = arith.constant 0 : i32
    %c0_i32_0 = arith.constant 0 : i32
    %c0_i32_1 = arith.constant 0 : i32
    return %c0_i32, %c0_i32_0 : i32, i32
  }
  func.func @transform_2(%arg0: i32) -> (i32, i32) {
    %c0_i32 = arith.constant 0 : i32
    %c0_i32_0 = arith.constant 0 : i32
    %c0_i32_1 = arith.constant 0 : i32
    return %c0_i32, %c0_i32_0 : i32, i32
  }
  func.func @transform_3(%arg0: i32) -> (i32, i32) {
    %c0_i32 = arith.constant 0 : i32
    %c0_i32_0 = arith.constant 0 : i32
    %c0_i32_1 = arith.constant 0 : i32
    return %c0_i32, %c0_i32_0 : i32, i32
  }
  func.func @transform_4(%arg0: i32) -> (i32, i32) {
    %c0_i32 = arith.constant 0 : i32
    %c0_i32_0 = arith.constant 0 : i32
    %c0_i32_1 = arith.constant 0 : i32
    return %c0_i32, %c0_i32_0 : i32, i32
  }
  func.func @transform_5(%arg0: i32) -> (i32, i32) {
    %c0_i32 = arith.constant 0 : i32
    %c0_i32_0 = arith.constant 0 : i32
    return %arg0, %c0_i32 : i32, i32
  }
}

</mosaic_0001>

<bundles_post_ra>
// kernel: tpu_custom_call.1
= control target key start
LH: loop header
LB: loop body
LE: loop exit
PB: predicated region body
PF: predicated region fallthrough
CT: control target
= control target key end

     0   :  { %10 = vsyncpa [#allocation3], 0  ;;  %s503_s0 = inlined_call_operand.hbm [shape: f32[16,16], index: 0, kind: input, shape index: {}]   ;;  %s504_s1 = inlined_call_operand.hbm [shape: f32[16,128], index: 1, kind: input, shape index: {}]   ;;  %s505_s2 = inlined_call_operand.vmem [shape: f32[1,128], index: 2, kind: input, shape index: {}]   ;;  %s506_s3 = inlined_call_operand.hbm [shape: f32[128,128], index: 3, kind: input, shape index: {}]   ;;  %s507_s4 = inlined_call_operand.vmem [shape: f32[1,128], index: 4, kind: input, shape index: {}]   ;;  %s508_s5 = inlined_call_operand.hbm [shape: f32[16,128], index: 5, kind: output, shape index: {}]  }
   0x1   :  { %11 = vsyncpa [#allocation6], 0 }
   0x2   :  { %12 = vsyncpa [#allocation4], 0  ;;  %s435_s18 = smov [#allocation5]   ;;  %s436_s20 = smov [#allocation2]  }
   0x3   :  { %s30_s19 = sshll.u32 %s435_s18, 4  ;;  %s18_s21 = sshll.u32 %s436_s20, 4  ;;  %s31_s19 = int_to_ptr.vmem [resolvable:$true] %s30_s19  ;;  %s19_s21 = int_to_ptr.vmem [resolvable:$true] %s18_s21 }
   0x4   :  { %s357_s22 = scalar_lea.vmem %s31_s19, 256  ;;  %p362_p1 = scmp.lt.s32.totalorder %s31_s19, %s31_s19 }
   0x5   :  { %p358_p0 = scmp.ne.s32.totalorder %s31_s19, %s357_s22  ;;  %p363_p2 = scmp.lt.s32.totalorder %s357_s22, %s357_s22 }
   0x7   :  { %p364_p3 = por %p363_p2, %p362_p1 }
   0x9   :  { %p365_p4 = pnand %p364_p3, %p358_p0 }
   0xb   :  { %368 = shalt.err (!%p365_p4)
}
   0xc   :  { %s437_s23 = smov 128   ;;  %s438_s24 = smov 8  }
   0xd   :  { %36 = dma.hbm_to_vmem [thread:$0]  %s504_s1, 256, %s31_s19, [#allocation6], %s437_s23, %s437_s23, %s438_s24  }
   0xe   :  { %s377_s27 = scalar_lea.vmem %s19_s21, 256  ;;  %p382_p6 = scmp.lt.s32.totalorder %s19_s21, %s19_s21 }
   0xf   :  { %p378_p5 = scmp.ne.s32.totalorder %s19_s21, %s377_s27  ;;  %p383_p7 = scmp.lt.s32.totalorder %s377_s27, %s377_s27 }
  0x11   :  { %p384_p8 = por %p383_p7, %p382_p6 }
  0x13   :  { %p385_p9 = pnand %p384_p8, %p378_p5 }
  0x15   :  { %388 = shalt.err (!%p385_p9)
}
  0x16   :  { %24 = dma.hbm_to_vmem [thread:$0]  %s503_s0, 256, %s19_s21, [#allocation3], %s437_s23, %s437_s23, %s438_s24  }
  0x17   :  { %s439_s30 = smov [#allocation7]  }
  0x18   :  { %s44_s6 = sshll.u32 %s439_s30, 4  ;;  %s45_s6 = int_to_ptr.vmem [resolvable:$true] %s44_s6 }
  0x19   :  { %s397_s7 = scalar_lea.vmem %s45_s6, 2048  ;;  %p402_p11 = scmp.lt.s32.totalorder %s45_s6, %s45_s6 }
  0x1a   :  { %p398_p10 = scmp.ne.s32.totalorder %s45_s6, %s397_s7  ;;  %p403_p12 = scmp.lt.s32.totalorder %s397_s7, %s397_s7 }
  0x1c   :  { %p404_p13 = por %p403_p12, %p402_p11 }
  0x1e   :  { %p405_p0 = pnand %p404_p13, %p398_p10 }
  0x20   :  { %408 = shalt.err (!%p405_p0)
}
  0x21   :  { %50 = dma.hbm_to_vmem [thread:$0]  %s506_s3, 2048, %s45_s6, [#allocation6], %s437_s23, %s437_s23, %s438_s24  }
  0x22   :  { %429 = dma.done.wait [#allocation3], 256  }
  0x23   :  { %430 = vsyncadd [#allocation3], 4294967040 }
  0x24   :  { %431 = dma.done.wait [#allocation6], 2304  }
  0x25   :  { %432 = vsyncadd [#allocation6], 4294964992  ;;  %vm73_vm0 = vcmask 130048   ;;  %v65_v0 = vld [vmem:[#allocation5 + $0x8] sm:$0xff]  ;;  %v64_v1 = vld [vmem:[#allocation5] sm:$0xff]  ;;  %s440_s11 = smov [#allocation8]  }
  0x26   :  { %v62_v2 = vld [vmem:[#allocation2] sm:$0xff]  ;;  %301 = vmatprep.subr.mxu0 %v65_v0  ;;  %v172_v3 = vld [vmem:[#allocation7 + $0x78] sm:$0xff]  ;;  %v171_v4 = vld [vmem:[#allocation7 + $0x70] sm:$0xff]  ;;  %s262_s12 = sshll.u32 %s440_s11, 4  ;;  %s263_s12 = int_to_ptr.vmem [resolvable:$true] %s262_s12 }
  0x27   :  { %305 = vmatprep.mubr.msk.f32.mxu0 %vm73_vm0, %v62_v2  ;;  %302 = vmatpush3.msra.mxu0 %v65_v0  ;;  %v63_v5 = vld [vmem:[#allocation2 + $0x8] sm:$0xff]  ;;  %v169_v7 = vld [vmem:[#allocation7 + $0x60] sm:$0xff]  ;;  %v168_v8 = vld [vmem:[#allocation7 + $0x58] sm:$0xff]  ;;  %p414_p2 = scmp.lt.s32.totalorder %s263_s12, %s263_s12 }
  0x28   :  { %308 = vmatprep.subr.mxu1 %v172_v3  ;;  %303 = vmatprep.subr.mxu0 %v64_v1  ;;  %v170_v6 = vld [vmem:[#allocation7 + $0x68] sm:$0xff]  ;;  %v167_v9 = vld [vmem:[#allocation7 + $0x50] sm:$0xff]  ;;  %v165_v11 = vld [vmem:[#allocation7 + $0x40] sm:$0xff] }
  0x29   :  { %309 = vmatpush3.msra.mxu1 %v172_v3  ;;  %304 = vmatpush3.msra.mxu0 %v64_v1  ;;  %v166_v10 = vld [vmem:[#allocation7 + $0x48] sm:$0xff]  ;;  %v164_v12 = vld [vmem:[#allocation7 + $0x38] sm:$0xff]  ;;  %v163_v13 = vld [vmem:[#allocation7 + $0x30] sm:$0xff] }
  0x2a   :  { %310 = vmatprep.subr.mxu1 %v171_v4  ;;  %306 = vmatmul.mubr.msk.f32.vlgmr.msra.gmra.mxu0 %vm73_vm0, %v63_v5  ;;  %v162_v14 = vld [vmem:[#allocation7 + $0x28] sm:$0xff]  ;;  %v161_v15 = vld [vmem:[#allocation7 + $0x20] sm:$0xff]  ;;  %v160_v16 = vld [vmem:[#allocation7 + $0x18] sm:$0xff] }
  0x2b   :  { %311 = vmatpush3.msra.mxu1 %v171_v4  ;;  %v159_v17 = vld [vmem:[#allocation7 + $0x10] sm:$0xff]  ;;  %v158_v18 = vld [vmem:[#allocation7 + $0x8] sm:$0xff]  ;;  %v157_v19 = vld [vmem:[#allocation7] sm:$0xff] }
  0x2c   :  { %312 = vmatprep.subr.mxu1 %v170_v6  ;;  %v275_v20 = vld [vmem:[%s505_s2] ss:$0 sm:$0xff]  ;;  %s409_s2 = scalar_lea.vmem %s263_s12, 256 }
  0x2d   :  { %313 = vmatpush3.msra.mxu1 %v170_v6  ;;  %v278_v27 = vld [vmem:[%s507_s4] ss:$0 sm:$0xff]  ;;  %p410_p1 = scmp.ne.s32.totalorder %s263_s12, %s409_s2  ;;  %p415_p3 = scmp.lt.s32.totalorder %s409_s2, %s409_s2 }
  0x2e   :  { %314 = vmatprep.subr.mxu1 %v169_v7 }
  0x2f   :  { %315 = vmatpush3.msra.mxu1 %v169_v7  ;;  %p416_p4 = por %p415_p3, %p414_p2 }
  0x30   :  { %316 = vmatprep.subr.mxu1 %v168_v8 }
  0x31   :  { %317 = vmatpush3.msra.mxu1 %v168_v8  ;;  %p417_p5 = pnand %p416_p4, %p410_p1 }
  0x32   :  { %318 = vmatprep.subr.mxu1 %v167_v9 }
  0x33   :  { %319 = vmatpush3.msra.mxu1 %v167_v9 }
  0x34   :  { %320 = vmatprep.subr.mxu1 %v166_v10 }
  0x35   :  { %321 = vmatpush3.msra.mxu1 %v166_v10 }
  0x36   :  { %322 = vmatprep.subr.mxu1 %v165_v11 }
  0x37   :  { %323 = vmatpush3.msra.mxu1 %v165_v11 }
  0x38   :  { %324 = vmatprep.subr.mxu1 %v164_v12 }
  0x39   :  { %325 = vmatpush3.msra.mxu1 %v164_v12 }
  0x3a   :  { %326 = vmatprep.subr.mxu1 %v163_v13 }
  0x3b   :  { %327 = vmatpush3.msra.mxu1 %v163_v13 }
  0x3c   :  { %328 = vmatprep.subr.mxu1 %v162_v14 }
  0x3d   :  { %329 = vmatpush3.msra.mxu1 %v162_v14 }
  0x3e   :  { %330 = vmatprep.subr.mxu1 %v161_v15 }
  0x3f   :  { %331 = vmatpush3.msra.mxu1 %v161_v15 }
  0x40   :  { %332 = vmatprep.subr.mxu1 %v160_v16 }
  0x41   :  { %333 = vmatpush3.msra.mxu1 %v160_v16 }
  0x42   :  { %334 = vmatprep.subr.mxu1 %v159_v17 }
  0x43   :  { %335 = vmatpush3.msra.mxu1 %v159_v17 }
  0x44   :  { %336 = vmatprep.subr.mxu1 %v158_v18 }
  0x45   :  { %337 = vmatpush3.msra.mxu1 %v158_v18 }
  0x46   :  { %338 = vmatprep.subr.mxu1 %v157_v19 }
  0x47   :  { %339 = vmatpush3.msra.mxu1 %v157_v19 }
  0xea   :  { %v307_v21 = vpop.f32.mrf.mxu0 }
  0xeb   :  { %v152_v22 = vadd.f32 %v307_v21, %v275_v20 }
  0xec   :  { %v146_v23 = vpop.f32.mrf.mxu0 }
  0xed   :  { %v147_v24 = vadd.f32 %v275_v20, %v146_v23  ;;  %v156_v26 = vmax.f32 %v152_v22, 0.0 }
  0xef   :  { %v155_v25 = vmax.f32 %v147_v24, 0.0 }
  0xf1   :  { %340 = vmatprep.mubr.f32.mxu1 %v155_v25 }
  0xf2   :  { %341 = vmatmul.mubr.f32.vlgmr.msra.gmra.mxu1 %v156_v26 }
 0x1b2   :  { %v342_v28 = vpop.f32.mrf.mxu1 }
 0x1b3   :  { %v252_v29 = vadd.f32 %v342_v28, %v278_v27 }
 0x1b4   :  { %v246_v30 = vpop.f32.mrf.mxu1 }
 0x1b5   :  { %256 = vst [vmem:[#allocation8 + $0x8] sm:$0xff] %v252_v29  ;;  %v247_v31 = vadd.f32 %v278_v27, %v246_v30 }
 0x1b7   :  { %255 = vst [vmem:[#allocation8] sm:$0xff] %v247_v31 }
 0x1b8   :  { %420 = shalt.err (!%p417_p5)
}
 0x1b9   :  { %268 = dma.vmem_to_hbm [thread:$0]  %s263_s12, 256, %s508_s5, [#allocation4], %s437_s23, %s437_s23, %s438_s24  }
 0x1ba   :  { %433 = dma.done.wait [#allocation4], 256  }
 0x1bb   :  { %434 = vsyncadd [#allocation4], 4294967040 }
 0x1bc   :  { %272 = vsyncpa [#allocation3], 1 }
 0x1bd   :  { %273 = vsyncpa [#allocation6], 1 }
 0x1be   :  { %274 = vsyncpa [#allocation4], 1 }

</bundles_post_ra>
